<compile_context>
chip_gen: v7x
topology: tpu7x:2x2x1
jax: 0.10.0
libtpu: 0.0.40
codegen_flags: <defaults>
</compile_context>

<pallas_src>
import math
from functools import partial

import jax
import jax.numpy as jnp
from jax.experimental import pallas as pl
from jax.experimental.pallas import tpu as pltpu


_LANE_TILE_TARGET = 16384               # lanes per tile (amortizes ~0.35us/step)
_VMEM_BUDGET_BYTES = 12 * 1024 * 1024   # compute-block budget, v7x-safe


def _ceil_div(a, b):
    return -(-a // b)


def _round_up(a, b):
    return _ceil_div(a, b) * b


# ---------------------------------------------------------------------------
# Table construction (equivalent of __init__ / alter_seq_len buffers)
# ---------------------------------------------------------------------------
def build_rope_tables(dim, pt_seq_len=16, ft_seq_len=None, freqs_for="lang",
                      theta=10000.0, max_freq=10, num_freqs=1):
    if ft_seq_len is None:
        ft_seq_len = pt_seq_len
    if freqs_for == "lang":
        freqs = 1.0 / (theta ** (jnp.arange(0, dim, 2)[: dim // 2]
                                 .astype(jnp.float32) / dim))
    elif freqs_for == "pixel":
        freqs = jnp.linspace(1.0, max_freq / 2, dim // 2, dtype=jnp.float32) * math.pi
    elif freqs_for == "constant":
        freqs = jnp.ones((num_freqs,), jnp.float32)
    else:
        raise ValueError(f"unknown modality {freqs_for}")

    t = jnp.arange(ft_seq_len, dtype=jnp.float32) / ft_seq_len * pt_seq_len
    fr = jnp.einsum("i,f->if", t, freqs)                       # (S, dim//2)
    S, F = fr.shape
    f1 = jnp.broadcast_to(fr[:, None, :], (S, S, F))           # broadcat(...)
    f2 = jnp.broadcast_to(fr[None, :, :], (S, S, F))
    full = jnp.concatenate([f1, f2], axis=-1)                  # (S, S, 2F)
    freqs_cos = jnp.cos(full).reshape(-1, full.shape[-1])      # (S*S, D)
    freqs_sin = jnp.sin(full).reshape(-1, full.shape[-1])
    return freqs_cos, freqs_sin


# ---------------------------------------------------------------------------
# Pre-masked tables (done once in the wrapper; would be cached buffers in a
# real model)
# ---------------------------------------------------------------------------
def _prepare_tables(freqs_cos, freqs_sin, n_tokens, table_dtype):
    n_rows, d = freqs_cos.shape
    cos = freqs_cos.astype(jnp.float32)
    sin = freqs_sin.astype(jnp.float32)

    parity = (jnp.arange(d) % 2).astype(jnp.float32)   # 0 on even lanes, 1 on odd
    sin_even = sin * (parity - 1.0)                    # -sin on even lanes, 0 on odd
    sin_odd = sin * parity                             # +sin on odd lanes,  0 on even

    if n_tokens == n_rows + 1:
        # Odd token count: fold the CLS pass-through into the tables
        # (cos = 1, sin = 0 on the leading row) instead of slice + concat.
        one = jnp.ones((1, d), jnp.float32)
        zero = jnp.zeros((1, d), jnp.float32)
        cos = jnp.concatenate([one, cos], axis=0)
        sin_even = jnp.concatenate([zero, sin_even], axis=0)
        sin_odd = jnp.concatenate([zero, sin_odd], axis=0)
    elif n_tokens != n_rows:
        raise ValueError(
            f"token count {n_tokens} incompatible with rope table rows {n_rows}")

    return (cos.astype(table_dtype), sin_even.astype(table_dtype),
            sin_odd.astype(table_dtype))


# ---------------------------------------------------------------------------
# Pallas kernel
# ---------------------------------------------------------------------------
def _rope_kernel(x_ref, cos_ref, sin_even_ref, sin_odd_ref, o_ref, *,
                 total_lanes=None):
    # x_ref: (tb, tl) or (1, rows, cols); tables: (1, tl) or (rows, cols).
    rows, cols = x_ref.shape[-2], x_ref.shape[-1]
    x = x_ref[...].reshape(rows, cols).astype(jnp.float32)
    cos = cos_ref[...].astype(jnp.float32)
    sin_even = sin_even_ref[...].astype(jnp.float32)
    sin_odd = sin_odd_ref[...].astype(jnp.float32)

    if total_lanes is not None:
        # The last lane tile is padded past `total_lanes`; zero the pad lanes so
        # the (coefficient == 0) wrap products can never pick up NaN/Inf garbage.
        lane = jax.lax.broadcasted_iota(jnp.int32, (rows, cols), 1)
        lane = lane + pl.program_id(0) * cols
        x = jnp.where(lane < total_lanes, x, 0.0)

    # Pair swap via two XLU lane rolls.  Tiles always start at an even global
    # lane and the pre-masked sin tables are exactly zero where the wrap-around
    # value would be selected, so wrap values never contaminate a token.
    x_next = pltpu.roll(x, cols - 1, 1)   # x_next[j] = x[j + 1]
    x_prev = pltpu.roll(x, 1, 1)          # x_prev[j] = x[j - 1]

    out = x * cos + x_next * sin_even + x_prev * sin_odd
    o_ref[...] = out.reshape(o_ref.shape).astype(o_ref.dtype)


# ---------------------------------------------------------------------------
# Tiling helpers
# ---------------------------------------------------------------------------
def _pick_lane_tile(L):
    """Lane tile: a multiple of 128 (keeps the XLU rolls on aligned widths),
    as large as possible up to the target.  Prefers an exact divisor of L;
    otherwise the last tile is padded (handled in-kernel)."""
    cap = min(L, _LANE_TILE_TARGET)
    if cap < 128:
        return L                       # tiny feature row: single full-width block
    k = cap // 128
    while k >= 1:                      # largest multiple of 128 that divides L
        if L % (128 * k) == 0:
            return 128 * k
        k -= 1
    # No aligned divisor: balance L over the minimum (>= 2) number of tiles.
    nblk = max(2, _ceil_div(L, cap))
    return _round_up(_ceil_div(L, nblk), 128)


def _pick_batch_tile(B, tl, x_bytes, tab_bytes):
    """Batch tile: a multiple of 8 (sublane-aligned), grown until the VMEM
    budget is hit.  Prefers a divisor of B to avoid partial blocks."""
    if B < 8:
        return B                       # block == full batch dim (legal block)

    def fits(tb):
        blk = 4 * tb * tl * x_bytes + 6 * tl * tab_bytes   # 2x dbuf(x, out) + tables
        return blk <= _VMEM_BUDGET_BYTES

    best, best_div = 8, None
    c = 8
    while c <= min(B, 256):
        if fits(c):
            best = c
            if B % c == 0:
                best_div = c
        c += 8
    return best_div if best_div is not None else best


def _pick_fold_factor(N, D, x_bytes, tab_bytes):
    """Small-batch path: fold f tokens per row so all 8 sublanes are used.
    Requires f | N, (f*D) % 128 == 0 and (N // f) % 8 == 0."""
    best = None
    for f in range(1, N + 1):
        if N % f == 0 and (f * D) % 128 == 0 and (N // f) % 8 == 0:
            best = f
    if best is None:
        return None
    rows, cols = N // best, best * D
    blk = 4 * rows * cols * x_bytes + 6 * rows * cols * tab_bytes
    if blk > _VMEM_BUDGET_BYTES:
        return None
    return best


# ---------------------------------------------------------------------------
# Forward wrapper (VisionRotaryEmbeddingFast.forward)
# ---------------------------------------------------------------------------
def _apply_rope(t, cos, sin_even, sin_odd):
    B, N, D = t.shape
    L = N * D
    x_bytes = jnp.dtype(t.dtype).itemsize
    tab_bytes = jnp.dtype(cos.dtype).itemsize

    cost = pl.CostEstimate(
        flops=5 * B * L, transcendentals=0,
        bytes_accessed=2 * B * L * x_bytes + 3 * L * tab_bytes)

    # ---- Small-batch layout: (B, N/f, f*D), one batch element per grid step.
    fold = _pick_fold_factor(N, D, x_bytes, tab_bytes) if B < 8 else None
    if fold is not None:
        rows, cols = N // fold, fold * D
        x = t.reshape(B, rows, cols)
        out = pl.pallas_call(
            partial(_rope_kernel, total_lanes=None),
            out_shape=jax.ShapeDtypeStruct((B, rows, cols), t.dtype),
            grid=(B,),
            in_specs=[
                pl.BlockSpec((1, rows, cols), lambda b: (b, 0, 0)),
                pl.BlockSpec((rows, cols), lambda b: (0, 0)),   # tables: fetched once
                pl.BlockSpec((rows, cols), lambda b: (0, 0)),
                pl.BlockSpec((rows, cols), lambda b: (0, 0)),
            ],
            out_specs=pl.BlockSpec((1, rows, cols), lambda b: (b, 0, 0)),
            compiler_params=pltpu.CompilerParams(
                dimension_semantics=("parallel",)),
            cost_estimate=cost,
        )(x, cos.reshape(rows, cols), sin_even.reshape(rows, cols),
          sin_odd.reshape(rows, cols))
        return out.reshape(B, N, D)

    # ---- General layout: (B, N*D), batch on sublanes, lane-dense last axis.
    tl = _pick_lane_tile(L)
    tb = _pick_batch_tile(B, tl, x_bytes, tab_bytes)
    # Make sure a v7x megacore gets >= 2 grid steps whenever possible.
    if pl.cdiv(L, tl) * pl.cdiv(B, tb) == 1 and L >= 256:
        half = _round_up(_ceil_div(L, 2), 128)
        if half < L:
            tl = half
    padded = (L % tl) != 0
    assert tl % 2 == 0          # feature pairs never straddle a lane-tile boundary

    x = t.reshape(B, L)
    grid = (pl.cdiv(L, tl), pl.cdiv(B, tb))
    # Grid order: lane tiles outermost, batch tiles innermost -> the (1, tl)
    # table blocks keep the same block index across the inner batch loop and
    # are DMA'd once per lane tile (not once per batch tile).
    out = pl.pallas_call(
        partial(_rope_kernel, total_lanes=L if padded else None),
        out_shape=jax.ShapeDtypeStruct((B, L), t.dtype),
        grid=grid,
        in_specs=[
            pl.BlockSpec((tb, tl), lambda j, i: (i, j)),   # x: (batch, lane) blocks
            pl.BlockSpec((1, tl), lambda j, i: (0, j)),    # tables: lane-only index
            pl.BlockSpec((1, tl), lambda j, i: (0, j)),
            pl.BlockSpec((1, tl), lambda j, i: (0, j)),
        ],
        out_specs=pl.BlockSpec((tb, tl), lambda j, i: (i, j)),
        compiler_params=pltpu.CompilerParams(
            dimension_semantics=("parallel", "parallel")),
        cost_estimate=cost,
    )(x, cos.reshape(1, L), sin_even.reshape(1, L), sin_odd.reshape(1, L))
    return out.reshape(B, N, D)


def vision_rotary_embedding_fast(t, freqs_cos, freqs_sin):
    """Pallas equivalent of VisionRotaryEmbeddingFast.forward.

    Handles the even-token case and the odd-token (leading CLS token) case
    with a single fused kernel; the CLS pass-through is folded into the rope
    tables.  In a real model the prepared tables would be cached as buffers.
    """
    B, N, D = t.shape
    assert D % 2 == 0, "rotary feature dim must be even"
    assert freqs_cos.shape[1] == D and freqs_sin.shape == freqs_cos.shape
    table_dtype = jnp.bfloat16 if t.dtype == jnp.bfloat16 else jnp.float32
    cos, sin_even, sin_odd = _prepare_tables(freqs_cos, freqs_sin, N, table_dtype)
    return _apply_rope(t, cos, sin_even, sin_odd)


# ---------------------------------------------------------------------------
# Pure-jnp reference (mirrors the torch module) for verification
# ---------------------------------------------------------------------------
def _rotate_half_ref(x):
    xs = x.reshape(*x.shape[:-1], x.shape[-1] // 2, 2)
    x1, x2 = xs[..., 0], xs[..., 1]
    return jnp.stack([-x2, x1], axis=-1).reshape(x.shape)


def _rope_ref(t, cos, sin):
    if t.shape[1] % 2 != 0:
        sp = t[:, 1:, :]
        sp = sp * cos + _rotate_half_ref(sp) * sin
        return jnp.concatenate([t[:, :1, :], sp], axis=1)
    return t * cos + _rotate_half_ref(t) * sin


if __name__ == "__main__":
    key = jax.random.PRNGKey(0)
    k1, k2, k3 = jax.random.split(key, 3)

    # Small config: rotary dim 32, 8x8 spatial grid -> 64 tokens, batch 2.
    dim = 32
    seq = 8
    B = 2
    freqs_cos, freqs_sin = build_rope_tables(dim, pt_seq_len=seq)   # (64, 32)
    N = freqs_cos.shape[0]

    # Even-length sequence (pure spatial tokens) -> small-batch folded layout.
    t_even = jax.random.normal(k1, (B, N, dim), dtype=jnp.float32)
    out_even = jax.block_until_ready(
        vision_rotary_embedding_fast(t_even, freqs_cos, freqs_sin))
    ref_even = _rope_ref(t_even, freqs_cos, freqs_sin)
    assert out_even.shape == (B, N, dim)
    assert jnp.allclose(out_even, ref_even, rtol=1e-5, atol=1e-5)

    # Odd-length sequence (CLS token + spatial tokens) -> CLS folded into
    # tables, flat (B, N*D) layout with a padded last lane tile.
    t_odd = jax.random.normal(k2, (B, N + 1, dim), dtype=jnp.float32)
    out_odd = jax.block_until_ready(
        vision_rotary_embedding_fast(t_odd, freqs_cos, freqs_sin))
    ref_odd = _rope_ref(t_odd, freqs_cos, freqs_sin)
    assert out_odd.shape == (B, N + 1, dim)
    assert jnp.allclose(out_odd, ref_odd, rtol=1e-5, atol=1e-5)

    # Larger batched config exercising the (B, N*D) multi-lane-tile layout.
    dim_l, seq_l, B_l = 128, 16, 16
    fcos_l, fsin_l = build_rope_tables(dim_l, pt_seq_len=seq_l)     # (256, 128)
    N_l = fcos_l.shape[0]
    t_big = jax.random.normal(k3, (B_l, N_l, dim_l), dtype=jnp.float32)
    out_big = jax.block_until_ready(
        vision_rotary_embedding_fast(t_big, fcos_l, fsin_l))
    ref_big = _rope_ref(t_big, fcos_l, fsin_l)
    assert out_big.shape == (B_l, N_l, dim_l)
    assert jnp.allclose(out_big, ref_big, rtol=1e-5, atol=1e-5)

    print("KERNEL_OK")
</pallas_src>

<mosaic_0001>
module attributes {stable_mosaic.version = 11 : i64} {
  func.func @_rope_kernel(%arg0: i32, %arg1: memref<1x8x256xf32, #tpu.memory_space<vmem>>, %arg2: memref<8x256xf32, #tpu.memory_space<vmem>>, %arg3: memref<8x256xf32, #tpu.memory_space<vmem>>, %arg4: memref<8x256xf32, #tpu.memory_space<vmem>>, %arg5: memref<1x8x256xf32, #tpu.memory_space<vmem>>) attributes {dimension_semantics = [#tpu.dimension_semantics<parallel>], iteration_bounds = array<i64: 2>, scalar_prefetch = 0 : i64, scratch_operands = 0 : i64, tpu.core_type = #tpu.core_type<tc>, window_params = [{transform_indices = @transform_0, window_bounds = array<i64: 1, 8, 256>}, {pipeline_mode = #tpu.pipeline_mode<synchronous>, transform_indices = @transform_1, window_bounds = array<i64: 8, 256>}, {pipeline_mode = #tpu.pipeline_mode<synchronous>, transform_indices = @transform_2, window_bounds = array<i64: 8, 256>}, {pipeline_mode = #tpu.pipeline_mode<synchronous>, transform_indices = @transform_3, window_bounds = array<i64: 8, 256>}, {transform_indices = @transform_4, window_bounds = array<i64: 1, 8, 256>}]} {
    %c0 = arith.constant 0 : index
    %c0_0 = arith.constant 0 : index
    %c0_1 = arith.constant 0 : index
    %0 = vector.load %arg1[%c0, %c0_0, %c0_1] : memref<1x8x256xf32, #tpu.memory_space<vmem>>, vector<1x8x256xf32>
    %1 = vector.shape_cast %0 : vector<1x8x256xf32> to vector<8x256xf32>
    %c0_2 = arith.constant 0 : index
    %c0_3 = arith.constant 0 : index
    %2 = vector.load %arg2[%c0_2, %c0_3] : memref<8x256xf32, #tpu.memory_space<vmem>>, vector<8x256xf32>
    %c0_4 = arith.constant 0 : index
    %c0_5 = arith.constant 0 : index
    %3 = vector.load %arg3[%c0_4, %c0_5] : memref<8x256xf32, #tpu.memory_space<vmem>>, vector<8x256xf32>
    %c0_6 = arith.constant 0 : index
    %c0_7 = arith.constant 0 : index
    %4 = vector.load %arg4[%c0_6, %c0_7] : memref<8x256xf32, #tpu.memory_space<vmem>>, vector<8x256xf32>
    %c255_i32 = arith.constant 255 : i32
    %5 = tpu.dynamic_rotate %1 by %c255_i32 dim 1 : vector<8x256xf32>, i32 -> vector<8x256xf32>
    %c1_i32 = arith.constant 1 : i32
    %6 = tpu.dynamic_rotate %1 by %c1_i32 dim 1 : vector<8x256xf32>, i32 -> vector<8x256xf32>
    %7 = arith.mulf %1, %2 : vector<8x256xf32>
    %8 = arith.mulf %5, %3 : vector<8x256xf32>
    %9 = arith.addf %7, %8 : vector<8x256xf32>
    %10 = arith.mulf %6, %4 : vector<8x256xf32>
    %11 = arith.addf %9, %10 : vector<8x256xf32>
    %12 = vector.shape_cast %11 : vector<8x256xf32> to vector<1x8x256xf32>
    %c0_8 = arith.constant 0 : index
    %c0_9 = arith.constant 0 : index
    %c0_10 = arith.constant 0 : index
    %13 = vector.load %arg5[%c0_8, %c0_9, %c0_10] : memref<1x8x256xf32, #tpu.memory_space<vmem>>, vector<1x8x256xf32>
    tpu.vector_store %arg5[%c0_8, %c0_9, %c0_10], %12 {strides = array<i32>} : memref<1x8x256xf32, #tpu.memory_space<vmem>>, vector<1x8x256xf32>,
    return
  }
  func.func @transform_0(%arg0: i32) -> (i32, i32, i32) {
    %c0_i32 = arith.constant 0 : i32
    %c0_i32_0 = arith.constant 0 : i32
    %c0_i32_1 = arith.constant 0 : i32
    return %arg0, %c0_i32, %c0_i32_0 : i32, i32, i32
  }
  func.func @transform_1(%arg0: i32) -> (i32, i32) {
    %c0_i32 = arith.constant 0 : i32
    %c0_i32_0 = arith.constant 0 : i32
    %c0_i32_1 = arith.constant 0 : i32
    return %c0_i32, %c0_i32_0 : i32, i32
  }
  func.func @transform_2(%arg0: i32) -> (i32, i32) {
    %c0_i32 = arith.constant 0 : i32
    %c0_i32_0 = arith.constant 0 : i32
    %c0_i32_1 = arith.constant 0 : i32
    return %c0_i32, %c0_i32_0 : i32, i32
  }
  func.func @transform_3(%arg0: i32) -> (i32, i32) {
    %c0_i32 = arith.constant 0 : i32
    %c0_i32_0 = arith.constant 0 : i32
    %c0_i32_1 = arith.constant 0 : i32
    return %c0_i32, %c0_i32_0 : i32, i32
  }
  func.func @transform_4(%arg0: i32) -> (i32, i32, i32) {
    %c0_i32 = arith.constant 0 : i32
    %c0_i32_0 = arith.constant 0 : i32
    %c0_i32_1 = arith.constant 0 : i32
    return %arg0, %c0_i32, %c0_i32_0 : i32, i32, i32
  }
}

</mosaic_0001>

<bundles_post_ra>
// kernel: tpu_custom_call.1
= control target key start
LH: loop header
LB: loop body
LE: loop exit
PB: predicated region body
PF: predicated region fallthrough
CT: control target
= control target key end

     0   :  { %9 = vsyncpa [#allocation3], 0  ;;  %s980_s0 = inlined_call_operand.hbm [shape: f32[2,8,256], index: 0, kind: input, shape index: {}]   ;;  %s981_s1 = inlined_call_operand.hbm [shape: f32[8,256], index: 1, kind: input, shape index: {}]   ;;  %s982_s2 = inlined_call_operand.hbm [shape: f32[8,256], index: 2, kind: input, shape index: {}]   ;;  %s983_s3 = inlined_call_operand.hbm [shape: f32[8,256], index: 3, kind: input, shape index: {}]   ;;  %s984_s4 = inlined_call_operand.hbm [shape: f32[2,8,256], index: 4, kind: output, shape index: {}]  }
   0x1   :  { %11 = vsyncpa [#allocation3 + $0x1], 0 }
   0x2   :  { %12 = vsyncpa [#allocation6], 0 }
   0x3   :  { %13 = vsyncpa [#allocation9], 0 }
   0x4   :  { %14 = vsyncpa [#allocation4], 0 }
   0x5   :  { %16 = vsyncpa [#allocation4 + $0x1], 0  ;;  %s725_s15 = smov 0   ;;  %s727_s16 = smov 0  }
   0x6   :  { %s729_s17 = smov 0   ;;  %s731_s18 = smov 0  }
   0x7 LB: > { %s746_s19 = sadd.s32 4294967295, %s691_s18   ;;  %s402_s20 = sadd.s32 4294967294, %s691_s18   ;;  %s691_s18 = sphi %s731_s18, %s1007_s18   ;;  %s687_s17 = sphi %s729_s17, %s1006_s17   ;;  %s683_s16 = sphi %s727_s16, %s1005_s16   ;;  %s679_s15 = sphi %s725_s15, %s1004_s15  }
   0x8   : > { %p42_p0 = scmp.ne.s32.totalorder %s683_s16, %s679_s15  ;;  %p985_p1 = scmp.eq.s32.totalorder %s746_s19, 0 }
   0x9   : > { %p135_p3 = scmp.eq.s32.totalorder %s402_s20, 1  ;;  %p403_p5 = scmp.ge.s32.totalorder %s691_s18, 1 }
   0xa   : > { %p755_p4 = por %p985_p1, %p42_p0  ;;  %p142_p7 = scmp.lt.s32.totalorder %s691_s18, 3 }
   0xb   : > { %p760_p6 = por %p135_p3, %p42_p0  ;;  %s693_s24 = smov [#allocation5]  }
   0xc   : > { %s988_s21 = scalar_select %p755_p4, 1, 0 }
   0xd   : > { %s989_s22 = scalar_select %p760_p6, 1, 0 }
   0xe   : > { %p765_p8 = pnand %p403_p5, %p142_p7  ;;  %s155_s25 = sshll.u32 %s693_s24, 4  ;;  %s156_s25 = int_to_ptr.vmem [resolvable:$true] %s155_s25 }
   0xf   : > { %s694_s26 = smov [#allocation7]   ;;  %s695_s29 = smov [#allocation8]  }
  0x10   : > { %s990_s23 = scalar_select %p765_p8, 1, 0 }
  0x11   : > { %p440_p10 = pneg %p765_p8  ;;  %s166_s27 = sshll.u32 %s694_s26, 4  ;;  %s778_s27 = int_to_ptr.vmem [resolvable:$true] %s166_s27 }
  0x12   : > { %s177_s30 = sshll.u32 %s695_s29, 4  ;;  %s503_s7 = scalar_lea.hbm %s981_s1, 256  ;;  %s780_s30 = int_to_ptr.vmem [resolvable:$true] %s177_s30 }
  0x13   : > { %p774_p11 = pnand %p440_p10, %p985_p1  ;;  %p504_p12 = scmp.ne.s32.totalorder %s981_s1, %s503_s7 }
  0x14   : > { %p510_p5 = scmp.lt.u32.totalorder %s503_s7, %s981_s1 }
  0x15   : > { %p790_p13 = pneg %p774_p11 }
  0x17   : > { %p506_p0 = pnand %p790_p13, %p504_p12 }
  0x19   : > { %p507_p3 = pneg %p506_p0 }
  0x1b   : > { %p512_p7 = pnand %p510_p5, %p507_p3 }
  0x1d   : > { %515 = shalt.err (!%p512_p7)
}
  0x1e   : > { %s516_s13 = scalar_lea.vmem %s156_s25, 256  ;;  %p524_p2 = scmp.lt.s32.totalorder %s156_s25, %s156_s25 }
  0x1f   : > { %p517_p10 = scmp.ne.s32.totalorder %s156_s25, %s516_s13  ;;  %p525_p6 = scmp.lt.s32.totalorder %s516_s13, %s516_s13 }
  0x21   : > { %p519_p9 = pnand %p517_p10, %p790_p13  ;;  %p526_p4 = por %p525_p6, %p524_p2 }
  0x23   : > { %p520_p1 = pneg %p519_p9 }
  0x25   : > { %p527_p8 = pnand %p526_p4, %p520_p1 }
  0x27   : > { %530 = shalt.err (!%p527_p8)
}
  0x28   : > { %443 = dma.hbm_to_vmem [thread:$0]  (!%p774_p11), %s981_s1, 256, %s156_s25, [#allocation6]  }
  0x29   : > { %s531_s29 = scalar_lea.hbm %s982_s2, 256 }
  0x2a   : > { %p532_p9 = scmp.ne.s32.totalorder %s982_s2, %s531_s29  ;;  %p538_p1 = scmp.lt.u32.totalorder %s531_s29, %s982_s2 }
  0x2c   : > { %p534_p12 = pnand %p532_p9, %p790_p13 }
  0x2e   : > { %p535_p2 = pneg %p534_p12 }
  0x30   : > { %p540_p4 = pnand %p538_p1, %p535_p2 }
  0x32   : > { %543 = shalt.err (!%p540_p4)
}
  0x33   : > { %s544_s25 = scalar_lea.vmem %s778_s27, 256  ;;  %p552_p3 = scmp.lt.s32.totalorder %s778_s27, %s778_s27 }
  0x34   : > { %p545_p6 = scmp.ne.s32.totalorder %s778_s27, %s544_s25  ;;  %p553_p5 = scmp.lt.s32.totalorder %s544_s25, %s544_s25 }
  0x36   : > { %p547_p8 = pnand %p545_p6, %p790_p13  ;;  %p554_p7 = por %p553_p5, %p552_p3 }
  0x38   : > { %p548_p0 = pneg %p547_p8 }
  0x3a   : > { %p555_p10 = pnand %p554_p7, %p548_p0 }
  0x3c   : > { %558 = shalt.err (!%p555_p10)
}
  0x3d   : > { %446 = dma.hbm_to_vmem [thread:$0]  (!%p774_p11), %s982_s2, 256, %s778_s27, [#allocation6]  }
  0x3e   : > { %s559_s14 = scalar_lea.hbm %s983_s3, 256 }
  0x3f   : > { %p560_p9 = scmp.ne.s32.totalorder %s983_s3, %s559_s14  ;;  %p566_p1 = scmp.lt.u32.totalorder %s559_s14, %s983_s3 }
  0x41   : > { %p562_p12 = pnand %p560_p9, %p790_p13 }
  0x43   : > { %p563_p2 = pneg %p562_p12 }
  0x45   : > { %p568_p4 = pnand %p566_p1, %p563_p2 }
  0x47   : > { %571 = shalt.err (!%p568_p4)
}
  0x48   : > { %s572_s27 = scalar_lea.vmem %s780_s30, 256  ;;  %p580_p3 = scmp.lt.s32.totalorder %s780_s30, %s780_s30 }
  0x49   : > { %p573_p6 = scmp.ne.s32.totalorder %s780_s30, %s572_s27  ;;  %p581_p5 = scmp.lt.s32.totalorder %s572_s27, %s572_s27 }
  0x4b   : > { %p575_p8 = pnand %p573_p6, %p790_p13  ;;  %p582_p7 = por %p581_p5, %p580_p3 }
  0x4d   : > { %p576_p0 = pneg %p575_p8 }
  0x4f   : > { %p583_p10 = pnand %p582_p7, %p576_p0 }
  0x51   : > { %586 = shalt.err (!%p583_p10)
}
  0x52   : > { %449 = dma.hbm_to_vmem [thread:$0]  (!%p774_p11), %s983_s3, 256, %s780_s30, [#allocation9]  }
  0x53   : > { %s853_s10 = sadd.s32 1, %s691_s18   ;;  %s29_s7 = sadd.s32 1, %s687_s17 }
  0x54   : > { %s26_s28 = ssub.s32 %s691_s18, %s853_s10  ;;  %p36_p9 = scmp.ne.s32.totalorder %s687_s17, %s683_s16 }
  0x55   : > { %p27_p13 = scmp.eq.s32.totalorder %s26_s28, 0  ;;  %p37_p12 = scmp.eq.s32.totalorder %s691_s18, 0 }
  0x56   : > { %p461_p2 = scmp.lt.s32.totalorder %s691_s18, 2  ;;  %p993_p4 = scmp.eq.s32.totalorder %s746_s19, 1 }
  0x57   : > { %s863_s8 = scalar_select %p27_p13, %s687_s17, %s29_s7  }
  0x58   : > { %p38_p1 = por %p37_p12, %p36_p9  ;;  %p867_p6 = por %p993_p4, %p36_p9 }
  0x59   : > { %s188_s9 = sand.u32 1, %s687_s17   ;;  %s422_s11 = sshll.u32 %s691_s18, 8 }
  0x5a   : > { %s408_s30 = sshll.u32 %s188_s9, 4  ;;  %s876_s14 = scalar_lea.hbm %s980_s0, %s422_s11 }
  0x5b   : > { %s192_s20 = scalar_lea.vmem [#allocation2], %s408_s30  ;;  %p878_p11 = pnand %p461_p2, %p38_p1 }
  0x5c   : > { %s200_s24 = sshll.u32 %s192_s20, 4  ;;  %s189_s29 = scalar_lea.sflag [#allocation3], %s188_s9  ;;  %s882_s24 = int_to_ptr.vmem [resolvable:$true] %s200_s24 }
  0x5d   : > { %s587_s27 = scalar_lea.hbm %s876_s14, 256  ;;  %p589_p0 = pneg %p878_p11 }
  0x5e   : > { %p588_p8 = scmp.ne.s32.totalorder %s876_s14, %s587_s27  ;;  %s592_s28 = scalar_lea.hbm %s980_s0, 512 }
  0x5f   : > { %p593_p7 = scmp.lt.u32.totalorder %s876_s14, %s980_s0  ;;  %p594_p10 = scmp.lt.u32.totalorder %s592_s28, %s587_s27 }
  0x60   : > { %p590_p3 = pnand %p589_p0, %p588_p8  ;;  %p596_p9 = scmp.lt.u32.totalorder %s587_s27, %s876_s14 }
  0x61   : > { %p595_p13 = por %p594_p10, %p593_p7 }
  0x62   : > { %p591_p5 = pneg %p590_p3 }
  0x63   : > { %p597_p12 = por %p596_p9, %p595_p13 }
  0x65   : > { %p598_p2 = pnand %p597_p12, %p591_p5 }
  0x67   : > { %601 = shalt.err (!%p598_p2)
}
  0x68   : > { %s602_s9 = scalar_lea.vmem %s882_s24, 256  ;;  %s696_s30 = smov [#allocation2]  }
  0x69   : > { %p603_p1 = scmp.ne.s32.totalorder %s882_s24, %s602_s9  ;;  %s607_s12 = sshll.u32 %s696_s30, 4  ;;  %s608_s12 = int_to_ptr.vmem [resolvable:$false] %s607_s12 }
  0x6a   : > { %s609_s13 = scalar_lea.vmem %s608_s12, 512  ;;  %p610_p3 = scmp.lt.s32.totalorder %s882_s24, %s608_s12 }
  0x6b   : > { %p605_p4 = pnand %p603_p1, %p589_p0  ;;  %p611_p7 = scmp.lt.s32.totalorder %s609_s13, %s602_s9 }
  0x6d   : > { %p606_p8 = pneg %p605_p4  ;;  %p612_p10 = por %p611_p7, %p610_p3 }
  0x6f   : > { %p613_p13 = pnand %p612_p10, %p606_p8 }
  0x71   : > { %616 = shalt.err (!%p613_p13)
}
  0x72   : > { %453 = dma.hbm_to_vmem [thread:$0]  (!%p878_p11), %s876_s14, 256, %s882_s24, %s189_s29  }
  0x73   : > { %p996_p5 = scmp.ne.s32.totalorder %s990_s23, 0 }
  0x74   : > { %s912_s20 = sand.u32 (!%p996_p5), 1, %s683_s16   ;;  %p997_p0 = scmp.ne.s32.totalorder (!%p996_p5), %s988_s21, 0 }
  0x75   : > { %209 = sbr.rel (%p996_p5) target bundleno = 273 (0x111), region = 36  ;;  %s412_s27 = sshll.u32 (!%p996_p5), %s912_s20, 4 }
  0x76   : > { %s212_s5 = scalar_lea.sflag (!%p996_p5), [#allocation3], %s912_s20  ;;  %s215_s6 = scalar_lea.vmem (!%p996_p5), [#allocation2], %s412_s27 }
  0x7c   : > { %662 = dma.done.wait (%p997_p0), %s212_s5, 256  }
  0x7d   : > { %664 = vsyncadd (%p997_p0), %s212_s5, 4294967040  ;;  %p998_p11 = scmp.eq.s32.totalorder %s746_s19, 0 }
  0x7f   : > { %666 = dma.done.wait (%p998_p11), [#allocation6], 512   ;;  %p999_p9 = pmov %p998_p11 }
  0x81   : > { %668 = vsyncadd (%p999_p9), [#allocation6], 4294966784  ;;  %p1000_p12 = pmov %p999_p9 }
  0x82   : > { %p1001_p2 = pmov %p999_p9 }
  0x83   : > { %670 = dma.done.wait (%p1000_p12), [#allocation9], 256  }
  0x84   : > { %672 = vsyncadd (%p1001_p2), [#allocation9], 4294967040  ;;  %v252_v0 = vld [vmem:[%s215_s6] sm:$0xff]  ;;  %s697_s23 = smov 1   ;;  %s698_s14 = smov 127   ;;  %v253_v1 = vld [vmem:[%s215_s6 + $0x8] sm:$0xff]  ;;  %v264_v2 = vlaneseq }
  0x85   : > { %269 = vrot.lane.b32.xlu1 %v252_v0, %s697_s23  ;;  %260 = vrot.lane.b32.xlu0 %v252_v0, %s698_s14  ;;  %v254_v6 = vld [vmem:[#allocation5] sm:$0xff]  ;;  %v255_v7 = vld [vmem:[#allocation5 + $0x8] sm:$0xff]  ;;  %v256_v8 = vld [vmem:[#allocation7] sm:$0xff]  ;;  %s423_s21 = sshll.u32 %s746_s19, 8  ;;  %s251_s24 = scalar_lea.vmem [#allocation10], %s412_s27 }
  0x86   : > { %v265_v3 = vand.u32 127, %v264_v2  ;;  %v257_v9 = vld [vmem:[#allocation7 + $0x8] sm:$0xff]  ;;  %v276_v10 = vmul.f32 %v254_v6, %v252_v0  ;;  %v277_v11 = vmul.f32 %v255_v7, %v253_v1  ;;  %v258_v14 = vld [vmem:[#allocation8] sm:$0xff]  ;;  %v259_v15 = vld [vmem:[#allocation8 + $0x8] sm:$0xff]  ;;  %s303_s26 = sshll.u32 %s251_s24, 4  ;;  %s936_s7 = scalar_lea.hbm %s984_s4, %s423_s21  ;;  %s938_s26 = int_to_ptr.vmem [resolvable:$true] %s303_s26 }
  0x87   : > { %s289_s19 = scalar_lea.sflag [#allocation4], %s912_s20  ;;  %s617_s11 = scalar_lea.vmem %s938_s26, 256 }
  0x88   : > { %vm273_vm0 = vcmp.lt.s32.totalorder %v265_v3, 1  ;;  %vm266_vm1 = vcmp.lt.s32.totalorder %v265_v3, 127  ;;  %p618_p1 = scmp.ne.s32.totalorder %s938_s26, %s617_s11  ;;  %s699_s9 = smov [#allocation10]  }
  0x89   : > { %271 = vrot.lane.b32.xlu1 %v253_v1, %s697_s23  ;;  %262 = vrot.lane.b32.xlu0 %v253_v1, %s698_s14  ;;  %s621_s30 = sshll.u32 %s699_s9, 4  ;;  %s622_s30 = int_to_ptr.vmem [resolvable:$false] %s621_s30 }
  0x8a   : > { %p619_p4 = pnand %p618_p1, %p867_p6  ;;  %s623_s12 = scalar_lea.vmem %s622_s30, 512 }
  0x8b   : > { %p624_p3 = scmp.lt.s32.totalorder %s938_s26, %s622_s30  ;;  %p625_p7 = scmp.lt.s32.totalorder %s623_s12, %s617_s11 }
  0x8c   : > { %p620_p8 = pneg %p619_p4 }
  0x8d   : > { %p626_p10 = por %p625_p7, %p624_p3 }
  0x8f   : > { %p627_p13 = pnand %p626_p10, %p620_p8 }
  0xf7   : > { %v270_v4 = vpop.permute.xlu1 %269  ;;  %v261_v5 = vpop.permute.xlu0 %260 }
  0xfb   : > { %v272_v12 = vpop.permute.xlu1 %271  ;;  %v263_v13 = vpop.permute.xlu0 %262 }
  0xfc   : > { %v274_v16 = vsel %vm273_vm0, %v270_v4, %v272_v12  ;;  %v275_v17 = vsel %vm273_vm0, %v272_v12, %v270_v4  ;;  %v267_v18 = vsel %vm266_vm1, %v261_v5, %v263_v13  ;;  %v268_v19 = vsel %vm266_vm1, %v263_v13, %v261_v5 }
  0xfd   : > { %v278_v20 = vmul.f32 %v267_v18, %v256_v8  ;;  %v279_v21 = vmul.f32 %v268_v19, %v257_v9  ;;  %v282_v22 = vmul.f32 %v275_v17, %v258_v14  ;;  %v283_v23 = vmul.f32 %v274_v16, %v259_v15 }
  0xff   : > { %v280_v24 = vadd.f32 %v278_v20, %v276_v10  ;;  %v281_v25 = vadd.f32 %v279_v21, %v277_v11 }
 0x101   : > { %v284_v26 = vadd.f32 %v282_v22, %v280_v24  ;;  %v285_v27 = vadd.f32 %v283_v23, %v281_v25 }
 0x103   : > { %286 = vst [vmem:[%s251_s24] sm:$0xff] %v284_v26  ;;  %287 = vst [vmem:[%s251_s24 + $0x8] sm:$0xff] %v285_v27 }
 0x104   : > { %630 = shalt.err (!%p627_p13)
}
 0x105   : > { %s631_s13 = scalar_lea.hbm %s936_s7, 256  ;;  %s635_s5 = scalar_lea.hbm %s984_s4, 512 }
 0x106   : > { %p632_p5 = scmp.ne.s32.totalorder %s936_s7, %s631_s13  ;;  %p636_p9 = scmp.lt.u32.totalorder %s936_s7, %s984_s4 }
 0x107   : > { %p637_p12 = scmp.lt.u32.totalorder %s635_s5, %s631_s13  ;;  %p639_p1 = scmp.lt.u32.totalorder %s631_s13, %s936_s7 }
 0x108   : > { %p633_p0 = pnand %p632_p5, %p867_p6 }
 0x109   : > { %p638_p2 = por %p637_p12, %p636_p9 }
 0x10a   : > { %p634_p11 = pneg %p633_p0 }
 0x10b   : > { %p640_p4 = por %p639_p1, %p638_p2 }
 0x10d   : > { %p641_p8 = pnand %p640_p4, %p634_p11 }
 0x10f   : > { %644 = shalt.err (!%p641_p8)
}
 0x110   : > { %438 = dma.vmem_to_hbm [thread:$0]  (%p867_p6), %s938_s26, 256, %s936_s7, %s289_s19  }
 0x111 PF: > { %s315_s14 = sand.u32 1, %s679_s15   ;;  %p1002_p3 = scmp.ne.s32.totalorder %s989_s22, 0 }
 0x112   : > { %p1003_p7 = scmp.ge.s32.totalorder %s691_s18, 2  ;;  %s316_s21 = scalar_lea.sflag [#allocation4], %s315_s14 }
 0x114   : > { %p455_p10 = pnand %p1003_p7, %p1002_p3 }
 0x116   : > { %674 = dma.done.wait (!%p455_p10), %s316_s21, 256  }
 0x117   : > { %676 = vsyncadd (!%p455_p10), %s316_s21, 4294967040  ;;  %p19_p13 = scmp.ge.s32.totalorder %s853_s10, 4   ;;  %s1004_s15 = smov %s683_s16 }
 0x118   : > { %s1005_s16 = smov %s687_s17  ;;  %s1006_s17 = smov %s863_s8 }
 0x119   : > { %s1007_s18 = smov %s853_s10  ;;  %21 = sbr.rel (!%p19_p13) target bundleno = 7 (0x7), region = 93 }
 0x120   :  { %321 = vsyncpa [#allocation3], 1 }
 0x121   :  { %323 = vsyncpa [#allocation3 + $0x1], 1 }
 0x122   :  { %324 = vsyncpa [#allocation6], 1 }
 0x123   :  { %325 = vsyncpa [#allocation9], 1 }
 0x124   :  { %326 = vsyncpa [#allocation4], 1 }
 0x125   :  { %328 = vsyncpa [#allocation4 + $0x1], 1 }

</bundles_post_ra>
